<compile_context>
chip_gen: v7x
topology: tpu7x:2x2x1
jax: 0.10.0
libtpu: 0.0.40
codegen_flags: <defaults>
</compile_context>

<pallas_src>
import jax
import jax.numpy as jnp
from jax.experimental import pallas as pl
from jax.experimental.pallas import tpu as pltpu


# ----------------------------- Pallas kernel ------------------------------

def generator_mlp_kernel(z_ref, lbl_ref, tab_ref, w1_ref, w2_ref, b2_ref,
                         w3_ref, b3_ref, o_ref):
    """Fused 3-layer MLP: (Linear->ReLU)->(Linear->ReLU)->(Linear->Tanh).

    Layer 1 uses the exact folded form
        relu(noise @ W1_noise  +  one_hot(labels) @ (label_emb @ W1_emb + b1)),
    so no embedding gather / concat / b1 add is needed.
    """
    bm = z_ref.shape[0]
    c_pad = tab_ref.shape[0]

    # Class contribution: gather-free one-hot matmul against the tiny table.
    onehot = (jax.lax.broadcasted_iota(jnp.int32, (bm, c_pad), 1)
              == lbl_ref[...]).astype(jnp.float32)
    contrib = jnp.dot(onehot, tab_ref[...],
                      preferred_element_type=jnp.float32)          # (bm, 256)

    # Layer 1 (bf16 MXU, f32 accumulate / elementwise).
    h1 = jnp.dot(z_ref[...], w1_ref[...], preferred_element_type=jnp.float32)
    h1 = jnp.maximum(h1 + contrib, 0.0)
    # Layer 2.
    h2 = jnp.dot(h1.astype(jnp.bfloat16), w2_ref[...],
                 preferred_element_type=jnp.float32)
    h2 = jnp.maximum(h2 + b2_ref[...], 0.0)
    # Layer 3 + Tanh (output columns are lane-padded; extras sliced outside).
    h3 = jnp.dot(h2.astype(jnp.bfloat16), w3_ref[...],
                 preferred_element_type=jnp.float32)
    o_ref[...] = jnp.tanh(h3 + b3_ref[...]).astype(o_ref.dtype)


# ------------------------------- helpers -----------------------------------

def _round_up(x, m):
    return ((x + m - 1) // m) * m


def _num_tensorcores():
    """Best-effort TensorCore-per-chip count (v7x has 2); defaults to 1."""
    try:
        info = pltpu.get_tpu_info()
        for attr in ("num_cores", "tensorcore_count", "num_tensorcores",
                     "cores_per_chip"):
            v = getattr(info, attr, None)
            if v:
                return int(v)
    except Exception:
        pass
    return 1


# ---------------------------- parameter setup -----------------------------

def init_params(key, noise_dim, embed_dim, num_classes, output_dim):
    """Deterministic init matching the PyTorch module's parameter shapes.
    Linear weights are stored pre-transposed as (in, out), f32."""
    in_dim = noise_dim + embed_dim
    ks = jax.random.split(key, 7)

    def linear(kw, kb, fan_in, fan_out):
        bound = 1.0 / jnp.sqrt(fan_in)
        w = jax.random.uniform(kw, (fan_in, fan_out), jnp.float32, -bound, bound)
        b = jax.random.uniform(kb, (1, fan_out), jnp.float32, -bound, bound)
        return w, b

    label_emb = jax.random.normal(ks[0], (num_classes, embed_dim), jnp.float32)
    w1, b1 = linear(ks[1], ks[2], in_dim, 256)
    w2, b2 = linear(ks[3], ks[4], 256, 512)
    w3, b3 = linear(ks[5], ks[6], 512, output_dim)
    return dict(label_emb=label_emb, w1=w1, b1=b1, w2=w2, b2=b2, w3=w3, b3=b3)


def prepare_generator_params(params, noise_dim):
    """One-time prep: bf16 weight copies, folded class table, lane-padded head.

    Exact rewrite of (embedding -> concat -> first Linear + bias):
        [noise, emb] @ W1 + b1 == noise @ W1[:nd] + (label_emb @ W1[nd:] + b1)
    """
    w1_full = params["w1"].astype(jnp.float32)      # (nd + ed, 256)
    num_classes = params["label_emb"].shape[0]

    class_table = params["label_emb"] @ w1_full[noise_dim:] + params["b1"]
    c_pad = _round_up(num_classes, 8)
    if c_pad != num_classes:                        # zero rows are never selected
        class_table = jnp.pad(class_table, ((0, c_pad - num_classes), (0, 0)))

    # Lane-dense output head: pad columns to a multiple of 128 (zeros).
    out_dim = params["w3"].shape[1]
    out_pad = _round_up(out_dim, 128)
    w3, b3 = params["w3"], params["b3"]
    if out_pad != out_dim:
        w3 = jnp.pad(w3, ((0, 0), (0, out_pad - out_dim)))
        b3 = jnp.pad(b3, ((0, 0), (0, out_pad - out_dim)))

    return dict(
        w1n=w1_full[:noise_dim].astype(jnp.bfloat16),          # (nd, 256)
        class_table=class_table.astype(jnp.float32),           # (C_pad, 256)
        w2=params["w2"].astype(jnp.bfloat16),                  # (256, 512)
        b2=params["b2"].astype(jnp.float32),                   # (1, 512)
        w3=w3.astype(jnp.bfloat16),                            # (512, out_pad)
        b3=b3.astype(jnp.float32),                             # (1, out_pad)
        noise_dim=noise_dim, out_dim=out_dim, out_pad=out_pad,
    )


# ------------------------------- wrapper -----------------------------------

def generator_forward(noise, labels, prep, *, block_m=512):
    """noise: (B, noise_dim) f32, labels: (B,) int -> (B, output_dim) f32."""
    B, noise_dim = noise.shape
    assert noise_dim == prep["noise_dim"]
    h1_dim = prep["w1n"].shape[1]
    h2_dim = prep["w2"].shape[1]
    out_pad, out_dim = prep["out_pad"], prep["out_dim"]
    c_pad = prep["class_table"].shape[0]

    # Batch tile: multiple of 16 (bf16 sublane packing), as large as block_m
    # allows.  Single tile on 1-TC chips; on multi-TC chips split only when
    # each half still keeps full MXU occupancy (>= 256 rows).
    bm = min(block_m, _round_up(B, 16))
    if _num_tensorcores() >= 2 and pl.cdiv(B, bm) == 1 and bm >= 512:
        bm = _round_up(pl.cdiv(B, 2), 16)
    B_pad = _round_up(B, bm)

    z = noise.astype(jnp.bfloat16)
    lbl = labels.astype(jnp.int32).reshape(B, 1)
    if B_pad != B:
        pad = B_pad - B
        z = jnp.pad(z, ((0, pad), (0, 0)))
        lbl = jnp.pad(lbl, ((0, pad), (0, 0)))     # padded rows sliced off below

    grid = (B_pad // bm,)

    flops = 2 * B_pad * (noise_dim * h1_dim + c_pad * h1_dim
                         + h1_dim * h2_dim + h2_dim * out_pad)
    bytes_accessed = (z.size * 2 + lbl.size * 4
                      + prep["class_table"].size * 4
                      + prep["w1n"].size * 2 + prep["w2"].size * 2
                      + prep["b2"].size * 4
                      + prep["w3"].size * 2 + prep["b3"].size * 4
                      + B_pad * out_pad * 4)

    out = pl.pallas_call(
        generator_mlp_kernel,
        out_shape=jax.ShapeDtypeStruct((B_pad, out_pad), jnp.float32),
        grid_spec=pltpu.PrefetchScalarGridSpec(
            num_scalar_prefetch=0,
            grid=grid,
            in_specs=[
                pl.BlockSpec((bm, noise_dim),     lambda i: (i, 0)),  # noise tile
                pl.BlockSpec((bm, 1),             lambda i: (i, 0)),  # labels tile
                pl.BlockSpec((c_pad, h1_dim),     lambda i: (0, 0)),  # class table (+b1)
                pl.BlockSpec((noise_dim, h1_dim), lambda i: (0, 0)),  # W1 (noise rows)
                pl.BlockSpec((h1_dim, h2_dim),    lambda i: (0, 0)),  # W2
                pl.BlockSpec((1, h2_dim),         lambda i: (0, 0)),  # b2
                pl.BlockSpec((h2_dim, out_pad),   lambda i: (0, 0)),  # W3 (lane-padded)
                pl.BlockSpec((1, out_pad),        lambda i: (0, 0)),  # b3 (lane-padded)
            ],
            out_specs=pl.BlockSpec((bm, out_pad), lambda i: (i, 0)),
        ),
        compiler_params=pltpu.CompilerParams(
            dimension_semantics=("parallel",)),
        cost_estimate=pl.CostEstimate(
            flops=int(flops),
            transcendentals=int(B_pad * out_pad),
            bytes_accessed=int(bytes_accessed)),
    )(z, lbl, prep["class_table"], prep["w1n"], prep["w2"], prep["b2"],
      prep["w3"], prep["b3"])

    return out[:B, :out_dim]


# ------------------------------ reference ----------------------------------

def reference_forward(noise, labels, p):
    """Pure-JAX f32 reference with the original (lookup -> concat) semantics."""
    emb = jnp.take(p["label_emb"], labels, axis=0)
    x = jnp.concatenate([noise, emb], axis=1)
    h1 = jnp.maximum(x @ p["w1"] + p["b1"], 0.0)
    h2 = jnp.maximum(h1 @ p["w2"] + p["b2"], 0.0)
    return jnp.tanh(h2 @ p["w3"] + p["b3"])


# --------------------------------- main -----------------------------------

if __name__ == "__main__":
    noise_dim, embed_dim, num_classes, output_dim = 16, 16, 10, 64

    key = jax.random.PRNGKey(0)
    k_params, k_data = jax.random.split(key)
    params = init_params(k_params, noise_dim, embed_dim, num_classes, output_dim)
    prep = prepare_generator_params(params, noise_dim)   # one-time bf16/table prep

    # bf16 matmuls -> loosened tolerance vs the f32 reference.
    for batch in (8, 50):   # 8: tiny tile path; 50: padded-batch path
        k_noise, k_labels = jax.random.split(jax.random.fold_in(k_data, batch))
        noise = jax.random.normal(k_noise, (batch, noise_dim), jnp.float32)
        labels = jax.random.randint(k_labels, (batch,), 0, num_classes, jnp.int32)

        out = generator_forward(noise, labels, prep)
        out = jax.block_until_ready(out)

        ref = reference_forward(noise, labels, params)
        assert out.shape == (batch, output_dim)
        assert jnp.allclose(out, ref, atol=2e-2, rtol=2e-2), (
            f"mismatch at batch={batch}: max abs err "
            f"{float(jnp.max(jnp.abs(out - ref)))}")

    print("KERNEL_OK")
</pallas_src>

<mosaic_0001>
module attributes {stable_mosaic.version = 11 : i64} {
  func.func @generator_mlp_kernel(%arg0: i32, %arg1: memref<16x16xbf16, #tpu.memory_space<vmem>>, %arg2: memref<16x1xi32, #tpu.memory_space<vmem>>, %arg3: memref<16x256xf32, #tpu.memory_space<vmem>>, %arg4: memref<16x256xbf16, #tpu.memory_space<vmem>>, %arg5: memref<256x512xbf16, #tpu.memory_space<vmem>>, %arg6: memref<1x512xf32, #tpu.memory_space<vmem>>, %arg7: memref<512x128xbf16, #tpu.memory_space<vmem>>, %arg8: memref<1x128xf32, #tpu.memory_space<vmem>>, %arg9: memref<16x128xf32, #tpu.memory_space<vmem>>) attributes {dimension_semantics = [#tpu.dimension_semantics<parallel>], iteration_bounds = array<i64: 1>, scalar_prefetch = 0 : i64, scratch_operands = 0 : i64, tpu.core_type = #tpu.core_type<tc>, window_params = [{transform_indices = @transform_0, window_bounds = array<i64: 16, 16>}, {transform_indices = @transform_1, window_bounds = array<i64: 16, 1>}, {pipeline_mode = #tpu.pipeline_mode<synchronous>, transform_indices = @transform_2, window_bounds = array<i64: 16, 256>}, {pipeline_mode = #tpu.pipeline_mode<synchronous>, transform_indices = @transform_3, window_bounds = array<i64: 16, 256>}, {pipeline_mode = #tpu.pipeline_mode<synchronous>, transform_indices = @transform_4, window_bounds = array<i64: 256, 512>}, {pipeline_mode = #tpu.pipeline_mode<synchronous>, transform_indices = @transform_5, window_bounds = array<i64: 1, 512>}, {pipeline_mode = #tpu.pipeline_mode<synchronous>, transform_indices = @transform_6, window_bounds = array<i64: 512, 128>}, {pipeline_mode = #tpu.pipeline_mode<synchronous>, transform_indices = @transform_7, window_bounds = array<i64: 1, 128>}, {transform_indices = @transform_8, window_bounds = array<i64: 16, 128>}]} {
    %0 = tpu.iota {dimensions = array<i32: 1>} : vector<16x16xi32>
    %c0 = arith.constant 0 : index
    %c0_0 = arith.constant 0 : index
    %1 = vector.load %arg2[%c0, %c0_0] : memref<16x1xi32, #tpu.memory_space<vmem>>, vector<16x1xi32>
    %2 = vector.broadcast %1 : vector<16x1xi32> to vector<16x16xi32>
    %3 = arith.cmpi eq, %0, %2 : vector<16x16xi32>
    %4 = arith.extui %3 : vector<16x16xi1> to vector<16x16xi32>
    %5 = arith.sitofp %4 : vector<16x16xi32> to vector<16x16xf32>
    %c0_1 = arith.constant 0 : index
    %c0_2 = arith.constant 0 : index
    %6 = vector.load %arg3[%c0_1, %c0_2] : memref<16x256xf32, #tpu.memory_space<vmem>>, vector<16x256xf32>
    %cst = arith.constant dense<0.000000e+00> : vector<16x256xf32>
    %7 = tpu.matmul %5, %6, %cst {dimension_numbers = #tpu.dot_dimension_numbers<[1], [0], [0], [1], [0, 0, 1, 1], [], []>} : vector<16x16xf32>, vector<16x256xf32>, vector<16x256xf32> -> vector<16x256xf32>
    %c0_3 = arith.constant 0 : index
    %c0_4 = arith.constant 0 : index
    %8 = vector.load %arg1[%c0_3, %c0_4] : memref<16x16xbf16, #tpu.memory_space<vmem>>, vector<16x16xbf16>
    %c0_5 = arith.constant 0 : index
    %c0_6 = arith.constant 0 : index
    %9 = vector.load %arg4[%c0_5, %c0_6] : memref<16x256xbf16, #tpu.memory_space<vmem>>, vector<16x256xbf16>
    %cst_7 = arith.constant dense<0.000000e+00> : vector<16x256xf32>
    %10 = tpu.matmul %8, %9, %cst_7 {dimension_numbers = #tpu.dot_dimension_numbers<[1], [0], [0], [1], [0, 0, 1, 1], [], []>} : vector<16x16xbf16>, vector<16x256xbf16>, vector<16x256xf32> -> vector<16x256xf32>
    %11 = arith.addf %10, %7 : vector<16x256xf32>
    %cst_8 = arith.constant 0.000000e+00 : f32
    %12 = vector.broadcast %cst_8 : f32 to vector<16x256xf32>
    %13 = arith.maximumf %11, %12 : vector<16x256xf32>
    %14 = arith.truncf %13 : vector<16x256xf32> to vector<16x256xbf16>
    %c0_9 = arith.constant 0 : index
    %c0_10 = arith.constant 0 : index
    %15 = vector.load %arg5[%c0_9, %c0_10] : memref<256x512xbf16, #tpu.memory_space<vmem>>, vector<256x512xbf16>
    %cst_11 = arith.constant dense<0.000000e+00> : vector<16x512xf32>
    %16 = tpu.matmul %14, %15, %cst_11 {dimension_numbers = #tpu.dot_dimension_numbers<[1], [0], [0], [1], [0, 0, 1, 1], [], []>} : vector<16x256xbf16>, vector<256x512xbf16>, vector<16x512xf32> -> vector<16x512xf32>
    %c0_12 = arith.constant 0 : index
    %c0_13 = arith.constant 0 : index
    %17 = vector.load %arg6[%c0_12, %c0_13] : memref<1x512xf32, #tpu.memory_space<vmem>>, vector<1x512xf32>
    %18 = vector.broadcast %17 : vector<1x512xf32> to vector<16x512xf32>
    %19 = arith.addf %16, %18 : vector<16x512xf32>
    %cst_14 = arith.constant 0.000000e+00 : f32
    %20 = vector.broadcast %cst_14 : f32 to vector<16x512xf32>
    %21 = arith.maximumf %19, %20 : vector<16x512xf32>
    %22 = arith.truncf %21 : vector<16x512xf32> to vector<16x512xbf16>
    %c0_15 = arith.constant 0 : index
    %c0_16 = arith.constant 0 : index
    %23 = vector.load %arg7[%c0_15, %c0_16] : memref<512x128xbf16, #tpu.memory_space<vmem>>, vector<512x128xbf16>
    %cst_17 = arith.constant dense<0.000000e+00> : vector<16x128xf32>
    %24 = tpu.matmul %22, %23, %cst_17 {dimension_numbers = #tpu.dot_dimension_numbers<[1], [0], [0], [1], [0, 0, 1, 1], [], []>} : vector<16x512xbf16>, vector<512x128xbf16>, vector<16x128xf32> -> vector<16x128xf32>
    %c0_18 = arith.constant 0 : index
    %c0_19 = arith.constant 0 : index
    %25 = vector.load %arg8[%c0_18, %c0_19] : memref<1x128xf32, #tpu.memory_space<vmem>>, vector<1x128xf32>
    %26 = vector.broadcast %25 : vector<1x128xf32> to vector<16x128xf32>
    %27 = arith.addf %24, %26 : vector<16x128xf32>
    %28 = math.tanh %27 : vector<16x128xf32>
    %c0_20 = arith.constant 0 : index
    %c0_21 = arith.constant 0 : index
    %29 = vector.load %arg9[%c0_20, %c0_21] : memref<16x128xf32, #tpu.memory_space<vmem>>, vector<16x128xf32>
    tpu.vector_store %arg9[%c0_20, %c0_21], %28 {strides = array<i32>} : memref<16x128xf32, #tpu.memory_space<vmem>>, vector<16x128xf32>,
    return
  }
  func.func @transform_0(%arg0: i32) -> (i32, i32) {
    %c0_i32 = arith.constant 0 : i32
    %c0_i32_0 = arith.constant 0 : i32
    return %arg0, %c0_i32 : i32, i32
  }
  func.func @transform_1(%arg0: i32) -> (i32, i32) {
    %c0_i32 = arith.constant 0 : i32
    %c0_i32_0 = arith.constant 0 : i32
    return %arg0, %c0_i32 : i32, i32
  }
  func.func @transform_2(%arg0: i32) -> (i32, i32) {
    %c0_i32 = arith.constant 0 : i32
    %c0_i32_0 = arith.constant 0 : i32
    %c0_i32_1 = arith.constant 0 : i32
    return %c0_i32, %c0_i32_0 : i32, i32
  }
  func.func @transform_3(%arg0: i32) -> (i32, i32) {
    %c0_i32 = arith.constant 0 : i32
    %c0_i32_0 = arith.constant 0 : i32
    %c0_i32_1 = arith.constant 0 : i32
    return %c0_i32, %c0_i32_0 : i32, i32
  }
  func.func @transform_4(%arg0: i32) -> (i32, i32) {
    %c0_i32 = arith.constant 0 : i32
    %c0_i32_0 = arith.constant 0 : i32
    %c0_i32_1 = arith.constant 0 : i32
    return %c0_i32, %c0_i32_0 : i32, i32
  }
  func.func @transform_5(%arg0: i32) -> (i32, i32) {
    %c0_i32 = arith.constant 0 : i32
    %c0_i32_0 = arith.constant 0 : i32
    %c0_i32_1 = arith.constant 0 : i32
    return %c0_i32, %c0_i32_0 : i32, i32
  }
  func.func @transform_6(%arg0: i32) -> (i32, i32) {
    %c0_i32 = arith.constant 0 : i32
    %c0_i32_0 = arith.constant 0 : i32
    %c0_i32_1 = arith.constant 0 : i32
    return %c0_i32, %c0_i32_0 : i32, i32
  }
  func.func @transform_7(%arg0: i32) -> (i32, i32) {
    %c0_i32 = arith.constant 0 : i32
    %c0_i32_0 = arith.constant 0 : i32
    %c0_i32_1 = arith.constant 0 : i32
    return %c0_i32, %c0_i32_0 : i32, i32
  }
  func.func @transform_8(%arg0: i32) -> (i32, i32) {
    %c0_i32 = arith.constant 0 : i32
    %c0_i32_0 = arith.constant 0 : i32
    return %arg0, %c0_i32 : i32, i32
  }
}

</mosaic_0001>

<bundles_post_ra>
// kernel: tpu_custom_call.1
= control target key start
LH: loop header
LB: loop body
LE: loop exit
PB: predicated region body
PF: predicated region fallthrough
CT: control target
= control target key end

     0   :  { %13 = vsyncpa [#allocation3], 0  ;;  %s1656_s0 = inlined_call_operand.vmem [shape: bf16[16,16], index: 0, kind: input, shape index: {}]   ;;  %s1657_s1 = inlined_call_operand.vmem [shape: s32[16,1], index: 1, kind: input, shape index: {}]   ;;  %s1658_s2 = inlined_call_operand.hbm [shape: f32[16,256], index: 2, kind: input, shape index: {}]   ;;  %s1659_s3 = inlined_call_operand.vmem [shape: bf16[16,256], index: 3, kind: input, shape index: {}]   ;;  %s1660_s4 = inlined_call_operand.hbm [shape: bf16[256,512], index: 4, kind: input, shape index: {}]   ;;  %s1661_s5 = inlined_call_operand.vmem [shape: f32[1,512], index: 5, kind: input, shape index: {}]   ;;  %s1662_s6 = inlined_call_operand.hbm [shape: bf16[512,128], index: 6, kind: input, shape index: {}]   ;;  %s1663_s7 = inlined_call_operand.vmem [shape: f32[1,128], index: 7, kind: input, shape index: {}]   ;;  %s1664_s8 = inlined_call_operand.hbm [shape: f32[16,128], index: 8, kind: output, shape index: {}]  }
   0x1   :  { %14 = vsyncpa [#allocation6], 0 }
   0x2   :  { %15 = vsyncpa [#allocation4], 0  ;;  %s1514_s27 = smov [#allocation5]   ;;  %s1515_s29 = smov [#allocation2]  }
   0x3   :  { %s39_s28 = sshll.u32 %s1514_s27, 4  ;;  %s25_s30 = sshll.u32 %s1515_s29, 4  ;;  %s40_s28 = int_to_ptr.vmem [resolvable:$true] %s39_s28  ;;  %s1571_s30 = int_to_ptr.vmem [resolvable:$true] %s25_s30 }
   0x4   :  { %s1420_s11 = scalar_lea.hbm %s1660_s4, 8192 }
   0x5   :  { %p1421_p0 = scmp.ne.s32.totalorder %s1660_s4, %s1420_s11  ;;  %p1424_p1 = scmp.lt.u32.totalorder %s1420_s11, %s1660_s4 }
   0x7   :  { %p1426_p2 = pnand %p1424_p1, %p1421_p0 }
   0x9   :  { %1429 = shalt.err (!%p1426_p2)
}
   0xa   :  { %s1430_s16 = scalar_lea.vmem %s40_s28, 8192  ;;  %p1435_p4 = scmp.lt.s32.totalorder %s40_s28, %s40_s28 }
   0xb   :  { %p1431_p3 = scmp.ne.s32.totalorder %s40_s28, %s1430_s16  ;;  %p1436_p5 = scmp.lt.s32.totalorder %s1430_s16, %s1430_s16 }
   0xd   :  { %p1437_p6 = por %p1436_p5, %p1435_p4 }
   0xf   :  { %p1438_p7 = pnand %p1437_p6, %p1431_p3 }
  0x11   :  { %1441 = shalt.err (!%p1438_p7)
}
  0x12   :  { %s1516_s17 = smov 256   ;;  %s1517_s18 = smov 16  }
  0x13   :  { %45 = dma.hbm_to_vmem [thread:$0]  %s1660_s4, 8192, %s40_s28, [#allocation6], %s1516_s17, %s1516_s17, %s1517_s18  }
  0x14   :  { %s1442_s23 = scalar_lea.hbm %s1658_s2, 512 }
  0x15   :  { %p1443_p8 = scmp.ne.s32.totalorder %s1658_s2, %s1442_s23  ;;  %p1446_p9 = scmp.lt.u32.totalorder %s1442_s23, %s1658_s2 }
  0x17   :  { %p1448_p10 = pnand %p1446_p9, %p1443_p8 }
  0x19   :  { %1451 = shalt.err (!%p1448_p10)
}
  0x1a   :  { %s1452_s29 = scalar_lea.vmem %s1571_s30, 512  ;;  %p1457_p12 = scmp.lt.s32.totalorder %s1571_s30, %s1571_s30 }
  0x1b   :  { %p1453_p11 = scmp.ne.s32.totalorder %s1571_s30, %s1452_s29  ;;  %p1458_p13 = scmp.lt.s32.totalorder %s1452_s29, %s1452_s29 }
  0x1d   :  { %p1459_p0 = por %p1458_p13, %p1457_p12 }
  0x1f   :  { %p1460_p1 = pnand %p1459_p0, %p1453_p11 }
  0x21   :  { %1463 = shalt.err (!%p1460_p1)
}
  0x22   :  { %31 = dma.hbm_to_vmem [thread:$0]  %s1658_s2, 512, %s1571_s30, [#allocation3], %s1516_s17, %s1516_s17, %s1517_s18  }
  0x23   :  { %s1518_s9 = smov [#allocation7]   ;;  %s1464_s13 = scalar_lea.hbm %s1662_s6, 4096 }
  0x24   :  { %s53_s10 = sshll.u32 %s1518_s9, 4  ;;  %p1465_p2 = scmp.ne.s32.totalorder %s1662_s6, %s1464_s13  ;;  %s54_s10 = int_to_ptr.vmem [resolvable:$true] %s53_s10 }
  0x25   :  { %p1468_p3 = scmp.lt.u32.totalorder %s1464_s13, %s1662_s6 }
  0x27   :  { %p1470_p4 = pnand %p1468_p3, %p1465_p2 }
  0x29   :  { %1473 = shalt.err (!%p1470_p4)
}
  0x2a   :  { %s1474_s20 = scalar_lea.vmem %s54_s10, 4096  ;;  %p1479_p6 = scmp.lt.s32.totalorder %s54_s10, %s54_s10 }
  0x2b   :  { %p1475_p5 = scmp.ne.s32.totalorder %s54_s10, %s1474_s20  ;;  %p1480_p7 = scmp.lt.s32.totalorder %s1474_s20, %s1474_s20 }
  0x2d   :  { %p1481_p8 = por %p1480_p7, %p1479_p6 }
  0x2f   :  { %p1482_p9 = pnand %p1481_p8, %p1475_p5 }
  0x31   :  { %1485 = shalt.err (!%p1482_p9)
}
  0x32   :  { %s1519_s2 = smov 64   ;;  %s1520_s30 = smov 4  }
  0x33   :  { %59 = dma.hbm_to_vmem [thread:$0]  %s1662_s6, 4096, %s54_s10, [#allocation6], %s1519_s2, %s1519_s2, %s1520_s30  }
  0x34   :  { %1508 = dma.done.wait [#allocation3], 512  }
  0x35   :  { %1509 = vsyncadd [#allocation3], 4294966784 }
  0x36   :  { %1510 = dma.done.wait [#allocation6], 12288  }
  0x37   :  { %1511 = vsyncadd [#allocation6], 4294955008  ;;  %v1521_v0 = vmov 0   ;;  %v1522_v1 = vmov 0.0   ;;  %v74_v2 = vld [vmem:[%s1657_s1] sm:$0xff]  ;;  %v75_v3 = vld [vmem:[%s1657_s1 + $0x8] sm:$0xff]  ;;  %v72_v40 = vlaneseq }
  0x38   :  { %1283 = vset.pattern.permute.xlu0 %v1521_v0  ;;  %230 = vmatprep.mubr.bf16.mxu1 %v1521_v0  ;;  %v1284_v4 = vld [vmem:[%s1659_s3 + $0x4] ss:$8 sps:$4 sm:$0xff]   ;;  %v91_v6 = vld [vmem:[#allocation2 + $0x18] sm:$0xff]  ;;  %v1286_v7 = vld [vmem:[%s1659_s3] ss:$8 sps:$4 sm:$0xff]   ;;  %vm92_vm0 = vcmask 130048  }
  0x39   :  { %163 = vmatprep.mubr.f32.mxu0 %v1522_v1  ;;  %77 = vperm.xlu0 %1283, %v74_v2   ;;  %v89_v5 = vld [vmem:[#allocation2 + $0x8] sm:$0xff]  ;;  %v88_v8 = vld [vmem:[#allocation2] sm:$0xff]  ;;  %v90_v10 = vld [vmem:[#allocation2 + $0x10] sm:$0xff]  ;;  %v73_v41 = vand.u32 127, %v72_v40  ;;  %s1523_s28 = smov [#allocation8]  }
  0x3a   :  { %198 = vmatprep.subr.bf16.mxu1 %v1284_v4  ;;  %v1267_v9 = vpack.c.bf16 %v91_v6, %v89_v5  ;;  %v1269_v11 = vpack.c.bf16 %v90_v10, %v88_v8  ;;  %v1287_v12 = vld [vmem:[%s1656_s0] sm:$0xff]   ;;  %v1291_v14 = vld [vmem:[#allocation5 + $0x8] ss:$16 sps:$4 sm:$0xff]   ;;  %v1293_v15 = vld [vmem:[#allocation5 + $0xc] ss:$16 sps:$4 sm:$0xff]   ;;  %s1105_s9 = sshll.u32 %s1523_s28, 4  ;;  %s1106_s9 = int_to_ptr.vmem [resolvable:$true] %s1105_s9 }
  0x3b   :  { %199 = vmatpush1.bf16.msra.mxu1 %v1286_v7  ;;  %v1290_v13 = vld [vmem:[#allocation5 + $0x4] ss:$16 sps:$4 sm:$0xff]   ;;  %v1299_v16 = vld [vmem:[#allocation5 + $0x2c] ss:$16 sps:$4 sm:$0xff]   ;;  %v1297_v17 = vld [vmem:[#allocation5 + $0x28] ss:$16 sps:$4 sm:$0xff]   ;;  %p1491_p11 = scmp.lt.s32.totalorder %s1106_s9, %s1106_s9 }
  0x3c   :  { %1268 = vmatprep.subr.bf16.mxu0 %v1267_v9  ;;  %696 = vmatprep.subr.bf16.mxu1 %v1293_v15  ;;  %v1305_v18 = vld [vmem:[#allocation5 + $0x4c] ss:$16 sps:$4 sm:$0xff]   ;;  %v1303_v19 = vld [vmem:[#allocation5 + $0x48] ss:$16 sps:$4 sm:$0xff]   ;;  %v1288_v43 = vld [vmem:[#allocation5] ss:$16 sps:$4 sm:$0xff]  }
  0x3d   :  { %80 = vperm.xlu0 %1283, %v75_v3   ;;  %1270 = vmatpush1.bf16.msra.mxu0 %v1269_v11  ;;  %v1311_v20 = vld [vmem:[#allocation5 + $0x6c] ss:$16 sps:$4 sm:$0xff]   ;;  %v1309_v21 = vld [vmem:[#allocation5 + $0x68] ss:$16 sps:$4 sm:$0xff]   ;;  %v1296_v44 = vld [vmem:[#allocation5 + $0x24] ss:$16 sps:$4 sm:$0xff]  }
  0x3e   :  { %1125 = vmatmul.mubr.msk.bf16.vlgmr.msra.gmra.mrb[0].mxu1 %vm92_vm0, %v1287_v12  ;;  %653 = vmatprep.subr.bf16.mxu0 %v1290_v13  ;;  %v1317_v22 = vld [vmem:[#allocation5 + $0x8c] ss:$16 sps:$4 sm:$0xff]   ;;  %v1315_v23 = vld [vmem:[#allocation5 + $0x88] ss:$16 sps:$4 sm:$0xff]   ;;  %v1294_v47 = vld [vmem:[#allocation5 + $0x20] ss:$16 sps:$4 sm:$0xff]  }
  0x3f   :  { %697 = vmatpush1.bf16.msra.mxu1 %v1291_v14  ;;  %v1323_v24 = vld [vmem:[#allocation5 + $0xac] ss:$16 sps:$4 sm:$0xff]   ;;  %v1321_v25 = vld [vmem:[#allocation5 + $0xa8] ss:$16 sps:$4 sm:$0xff]   ;;  %v1302_v48 = vld [vmem:[#allocation5 + $0x44] ss:$16 sps:$4 sm:$0xff]  }
  0x40   :  { %698 = vmatprep.subr.bf16.mxu1 %v1299_v16  ;;  %v1329_v26 = vld [vmem:[#allocation5 + $0xcc] ss:$16 sps:$4 sm:$0xff]   ;;  %v1327_v27 = vld [vmem:[#allocation5 + $0xc8] ss:$16 sps:$4 sm:$0xff]   ;;  %v1300_v50 = vld [vmem:[#allocation5 + $0x40] ss:$16 sps:$4 sm:$0xff]  }
  0x41   :  { %v1335_v28 = vld [vmem:[#allocation5 + $0xec] ss:$16 sps:$4 sm:$0xff]   ;;  %v1333_v29 = vld [vmem:[#allocation5 + $0xe8] ss:$16 sps:$4 sm:$0xff]   ;;  %v1308_v51 = vld [vmem:[#allocation5 + $0x64] ss:$16 sps:$4 sm:$0xff]  }
  0x42   :  { %v1341_v30 = vld [vmem:[#allocation5 + $0x10c] ss:$16 sps:$4 sm:$0xff]   ;;  %v1339_v31 = vld [vmem:[#allocation5 + $0x108] ss:$16 sps:$4 sm:$0xff]   ;;  %v1306_v52 = vld [vmem:[#allocation5 + $0x60] ss:$16 sps:$4 sm:$0xff]  }
  0x43   :  { %699 = vmatpush1.bf16.msra.mxu1 %v1297_v17  ;;  %v1347_v32 = vld [vmem:[#allocation5 + $0x12c] ss:$16 sps:$4 sm:$0xff]   ;;  %v1345_v33 = vld [vmem:[#allocation5 + $0x128] ss:$16 sps:$4 sm:$0xff]   ;;  %v1314_v53 = vld [vmem:[#allocation5 + $0x84] ss:$16 sps:$4 sm:$0xff]  }
  0x44   :  { %700 = vmatprep.subr.bf16.mxu1 %v1305_v18  ;;  %v1353_v34 = vld [vmem:[#allocation5 + $0x14c] ss:$16 sps:$4 sm:$0xff]   ;;  %v1351_v35 = vld [vmem:[#allocation5 + $0x148] ss:$16 sps:$4 sm:$0xff]   ;;  %v1312_v54 = vld [vmem:[#allocation5 + $0x80] ss:$16 sps:$4 sm:$0xff]  }
  0x45   :  { %v1359_v36 = vld [vmem:[#allocation5 + $0x16c] ss:$16 sps:$4 sm:$0xff]   ;;  %v1357_v37 = vld [vmem:[#allocation5 + $0x168] ss:$16 sps:$4 sm:$0xff]   ;;  %v1320_v55 = vld [vmem:[#allocation5 + $0xa4] ss:$16 sps:$4 sm:$0xff]  }
  0x46   :  { %v1365_v38 = vld [vmem:[#allocation5 + $0x18c] ss:$16 sps:$4 sm:$0xff]   ;;  %v1363_v39 = vld [vmem:[#allocation5 + $0x188] ss:$16 sps:$4 sm:$0xff]   ;;  %v1318_v56 = vld [vmem:[#allocation5 + $0xa0] ss:$16 sps:$4 sm:$0xff]  }
  0x47   :  { %701 = vmatpush1.bf16.msra.mxu1 %v1303_v19  ;;  %v1326_v57 = vld [vmem:[#allocation5 + $0xc4] ss:$16 sps:$4 sm:$0xff]   ;;  %v1324_v58 = vld [vmem:[#allocation5 + $0xc0] ss:$16 sps:$4 sm:$0xff]   ;;  %v1371_v8 = vld [vmem:[#allocation5 + $0x1ac] ss:$16 sps:$4 sm:$0xff]  }
  0x48   :  { %702 = vmatprep.subr.bf16.mxu1 %v1311_v20  ;;  %v1332_v59 = vld [vmem:[#allocation5 + $0xe4] ss:$16 sps:$4 sm:$0xff]   ;;  %v1330_v60 = vld [vmem:[#allocation5 + $0xe0] ss:$16 sps:$4 sm:$0xff]   ;;  %v1369_v10 = vld [vmem:[#allocation5 + $0x1a8] ss:$16 sps:$4 sm:$0xff]  }
  0x49   :  { %v1338_v61 = vld [vmem:[#allocation5 + $0x104] ss:$16 sps:$4 sm:$0xff]   ;;  %v1336_v62 = vld [vmem:[#allocation5 + $0x100] ss:$16 sps:$4 sm:$0xff]   ;;  %v1377_v12 = vld [vmem:[#allocation5 + $0x1cc] ss:$16 sps:$4 sm:$0xff]  }
  0x4a   :  { %v1344_v63 = vld [vmem:[#allocation5 + $0x124] ss:$16 sps:$4 sm:$0xff]   ;;  %v1342_v0 = vld [vmem:[#allocation5 + $0x120] ss:$16 sps:$4 sm:$0xff]   ;;  %v1375_v15 = vld [vmem:[#allocation5 + $0x1c8] ss:$16 sps:$4 sm:$0xff]  }
  0x4b   :  { %703 = vmatpush1.bf16.msra.mxu1 %v1309_v21  ;;  %v1348_v2 = vld [vmem:[#allocation5 + $0x140] ss:$16 sps:$4 sm:$0xff]   ;;  %v1356_v3 = vld [vmem:[#allocation5 + $0x164] ss:$16 sps:$4 sm:$0xff]   ;;  %v1383_v20 = vld [vmem:[#allocation5 + $0x1ec] ss:$16 sps:$4 sm:$0xff]  }
  0x4c   :  { %704 = vmatprep.subr.bf16.mxu1 %v1317_v22  ;;  %v1354_v4 = vld [vmem:[#allocation5 + $0x160] ss:$16 sps:$4 sm:$0xff]   ;;  %v1362_v5 = vld [vmem:[#allocation5 + $0x184] ss:$16 sps:$4 sm:$0xff]   ;;  %v1381_v22 = vld [vmem:[#allocation5 + $0x1e8] ss:$16 sps:$4 sm:$0xff]  }
  0x4d   :  { %v1360_v6 = vld [vmem:[#allocation5 + $0x180] ss:$16 sps:$4 sm:$0xff]   ;;  %v1368_v7 = vld [vmem:[#allocation5 + $0x1a4] ss:$16 sps:$4 sm:$0xff]  }
  0x4e   :  { %v1366_v9 = vld [vmem:[#allocation5 + $0x1a0] ss:$16 sps:$4 sm:$0xff]   ;;  %v1374_v11 = vld [vmem:[#allocation5 + $0x1c4] ss:$16 sps:$4 sm:$0xff]  }
  0x4f   :  { %705 = vmatpush1.bf16.msra.mxu1 %v1315_v23  ;;  %v1372_v14 = vld [vmem:[#allocation5 + $0x1c0] ss:$16 sps:$4 sm:$0xff]   ;;  %v1380_v19 = vld [vmem:[#allocation5 + $0x1e4] ss:$16 sps:$4 sm:$0xff]  }
  0x50   :  { %706 = vmatprep.subr.bf16.mxu1 %v1323_v24  ;;  %v1378_v21 = vld [vmem:[#allocation5 + $0x1e0] ss:$16 sps:$4 sm:$0xff]  }
  0x51   :  { %v1384_v23 = vld [vmem:[#allocation7 + $0x40] sm:$0xff]  }
  0x52   :  { %v1385_v24 = vld [vmem:[#allocation7 + $0xc0] sm:$0xff]  }
  0x53   :  { %707 = vmatpush1.bf16.msra.mxu1 %v1321_v25 }
  0x54   :  { %708 = vmatprep.subr.bf16.mxu1 %v1329_v26 }
  0x57   :  { %709 = vmatpush1.bf16.msra.mxu1 %v1327_v27 }
  0x58   :  { %710 = vmatprep.subr.bf16.mxu1 %v1335_v28 }
  0x5b   :  { %711 = vmatpush1.bf16.msra.mxu1 %v1333_v29 }
  0x5c   :  { %712 = vmatprep.subr.bf16.mxu1 %v1341_v30 }
  0x5f   :  { %713 = vmatpush1.bf16.msra.mxu1 %v1339_v31 }
  0x60   :  { %714 = vmatprep.subr.bf16.mxu1 %v1347_v32 }
  0x63   :  { %715 = vmatpush1.bf16.msra.mxu1 %v1345_v33 }
  0x64   :  { %716 = vmatprep.subr.bf16.mxu1 %v1353_v34 }
  0x67   :  { %717 = vmatpush1.bf16.msra.mxu1 %v1351_v35 }
  0x68   :  { %718 = vmatprep.subr.bf16.mxu1 %v1359_v36 }
  0x6b   :  { %719 = vmatpush1.bf16.msra.mxu1 %v1357_v37 }
  0x6c   :  { %720 = vmatprep.subr.bf16.mxu1 %v1365_v38 }
  0x6f   :  { %721 = vmatpush1.bf16.msra.mxu1 %v1363_v39  ;;  %v1386_v39 = vld [vmem:[#allocation7] sm:$0xff]  }
  0x70   :  { %722 = vmatprep.subr.bf16.mxu1 %v1371_v8 }
  0x73   :  { %723 = vmatpush1.bf16.msra.mxu1 %v1369_v10 }
  0x74   :  { %724 = vmatprep.subr.bf16.mxu1 %v1377_v12 }
  0x77   :  { %725 = vmatpush1.bf16.msra.mxu1 %v1375_v15 }
  0x78   :  { %726 = vmatprep.subr.bf16.mxu1 %v1383_v20 }
  0x7b   :  { %727 = vmatpush1.bf16.msra.mxu1 %v1381_v22 }
  0x7c   :  { %1245 = vmatprep.subr.bf16.mxu1 %v1385_v24 }
  0xb8   :  { %v78_v42 = vpop.permute.xlu0 %77 }
  0xb9   :  { %vm82_vm1 = vcmp.eq.s32.totalorder %v73_v41, %v78_v42  ;;  %v1388_v42 = vld [vmem:[#allocation7 + $0x48] sm:$0xff]  }
  0xba   :  { %v1118_v45 = vsel %vm82_vm1, 1.0, %v1522_v1 }
  0xbb   :  { %1120 = vmatmul.mubr.msk.f32.vlgmr.msra.gmra.mrb[0].mxu0 %vm92_vm0, %v1118_v45  ;;  %v1391_v45 = vld [vmem:[#allocation7 + $0x88] sm:$0xff]  }
  0xbc   :  { %v81_v46 = vpop.permute.xlu0 %80  ;;  %169 = vmatprep.mubr.f32.mxu0 %v1522_v1  ;;  %654 = vmatpush1.bf16.msra.mxu0 %v1288_v43  ;;  %v1389_v43 = vld [vmem:[#allocation7 + $0xc8] sm:$0xff]  }
  0xbd   :  { %vm83_vm2 = vcmp.eq.s32.totalorder %v73_v41, %v81_v46  ;;  %655 = vmatprep.subr.bf16.mxu0 %v1296_v44  ;;  %v1387_v41 = vld [vmem:[#allocation7 + $0x80] sm:$0xff]   ;;  %v1390_v44 = vld [vmem:[#allocation7 + $0x8] sm:$0xff]   ;;  %v1392_v46 = vld [vmem:[#allocation7 + $0x50] sm:$0xff]  }
  0xbe   :  { %v1119_v49 = vsel %vm83_vm2, 1.0, %v1522_v1  ;;  %v1350_v1 = vld [vmem:[#allocation5 + $0x144] ss:$16 sps:$4 sm:$0xff]  }
  0xbf   :  { %1121 = vmatmul.mubr.msk.f32.gmra.mrb[2].mxu0 %vm92_vm0, %v1119_v49  ;;  %v1395_v49 = vld [vmem:[#allocation7 + $0x90] sm:$0xff]  }
  0xc0   :  { %656 = vmatpush1.bf16.msra.mxu0 %v1294_v47  ;;  %v1393_v47 = vld [vmem:[#allocation7 + $0xd0] sm:$0xff]  }
  0xc1   :  { %657 = vmatprep.subr.bf16.mxu0 %v1302_v48  ;;  %v1394_v48 = vld [vmem:[#allocation7 + $0x10] sm:$0xff]  }
  0xc4   :  { %658 = vmatpush1.bf16.msra.mxu0 %v1300_v50  ;;  %v1396_v50 = vld [vmem:[#allocation7 + $0x58] sm:$0xff]  }
  0xc5   :  { %659 = vmatprep.subr.bf16.mxu0 %v1308_v51  ;;  %v1397_v51 = vld [vmem:[#allocation7 + $0xd8] sm:$0xff]  }
  0xc8   :  { %660 = vmatpush1.bf16.msra.mxu0 %v1306_v52  ;;  %v1398_v52 = vld [vmem:[#allocation7 + $0x18] sm:$0xff]  }
  0xc9   :  { %661 = vmatprep.subr.bf16.mxu0 %v1314_v53  ;;  %v1399_v53 = vld [vmem:[#allocation7 + $0x98] sm:$0xff]  }
  0xcc   :  { %662 = vmatpush1.bf16.msra.mxu0 %v1312_v54  ;;  %v1400_v54 = vld [vmem:[#allocation7 + $0x60] sm:$0xff]  }
  0xcd   :  { %663 = vmatprep.subr.bf16.mxu0 %v1320_v55  ;;  %v1401_v55 = vld [vmem:[#allocation7 + $0xe0] sm:$0xff]  }
  0xd0   :  { %664 = vmatpush1.bf16.msra.mxu0 %v1318_v56  ;;  %v1402_v56 = vld [vmem:[#allocation7 + $0x20] sm:$0xff]  }
  0xd1   :  { %665 = vmatprep.subr.bf16.mxu0 %v1326_v57  ;;  %v1403_v57 = vld [vmem:[#allocation7 + $0xa0] sm:$0xff]  }
  0xd4   :  { %666 = vmatpush1.bf16.msra.mxu0 %v1324_v58  ;;  %v1404_v58 = vld [vmem:[#allocation7 + $0x68] sm:$0xff]  }
  0xd5   :  { %667 = vmatprep.subr.bf16.mxu0 %v1332_v59  ;;  %v1405_v59 = vld [vmem:[#allocation7 + $0xe8] sm:$0xff]  }
  0xd8   :  { %668 = vmatpush1.bf16.msra.mxu0 %v1330_v60  ;;  %v1406_v60 = vld [vmem:[#allocation7 + $0x28] sm:$0xff]  }
  0xd9   :  { %669 = vmatprep.subr.bf16.mxu0 %v1338_v61  ;;  %v1407_v61 = vld [vmem:[#allocation7 + $0xa8] sm:$0xff]  }
  0xdc   :  { %670 = vmatpush1.bf16.msra.mxu0 %v1336_v62  ;;  %v1408_v62 = vld [vmem:[#allocation7 + $0x70] sm:$0xff]  }
  0xdd   :  { %671 = vmatprep.subr.bf16.mxu0 %v1344_v63  ;;  %v1409_v63 = vld [vmem:[#allocation7 + $0xf0] sm:$0xff]  }
  0xe0   :  { %672 = vmatpush1.bf16.msra.mxu0 %v1342_v0  ;;  %v1410_v0 = vld [vmem:[#allocation7 + $0x30] sm:$0xff]  }
  0xe1   :  { %673 = vmatprep.subr.bf16.mxu0 %v1350_v1  ;;  %v1411_v1 = vld [vmem:[#allocation7 + $0xb0] sm:$0xff]  }
  0xe4   :  { %674 = vmatpush1.bf16.msra.mxu0 %v1348_v2  ;;  %v1412_v2 = vld [vmem:[#allocation7 + $0x78] sm:$0xff]  }
  0xe5   :  { %675 = vmatprep.subr.bf16.mxu0 %v1356_v3  ;;  %v1413_v3 = vld [vmem:[#allocation7 + $0xf8] sm:$0xff]  }
  0xe8   :  { %676 = vmatpush1.bf16.msra.mxu0 %v1354_v4  ;;  %v1414_v4 = vld [vmem:[#allocation7 + $0x38] sm:$0xff]  }
  0xe9   :  { %677 = vmatprep.subr.bf16.mxu0 %v1362_v5  ;;  %v1415_v5 = vld [vmem:[#allocation7 + $0xb8] sm:$0xff]  }
  0xec   :  { %678 = vmatpush1.bf16.msra.mxu0 %v1360_v6  ;;  %v314_v6 = vshrl.u32 %v72_v40, 7 }
  0xed   :  { %679 = vmatprep.subr.bf16.mxu0 %v1368_v7 }
  0xee   :  { %v315_v7 = vsub.s32 0, %v314_v6  ;;  %v323_v8 = vsub.s32 2, %v314_v6  ;;  %v319_v10 = vsub.s32 1, %v314_v6 }
  0xf0   :  { %680 = vmatpush1.bf16.msra.mxu0 %v1366_v9  ;;  %v311_v9 = vld [vmem:[%s1661_s5] sm:$0xf] }
  0xf1   :  { %681 = vmatprep.subr.bf16.mxu0 %v1374_v11  ;;  %v327_v11 = vsub.s32 3, %v314_v6  ;;  %v316_v12 = vrot.slane %v311_v9, %v315_v7 }
  0xf3   :  { %v328_v15 = vrot.slane %v311_v9, %v327_v11 }
  0xf4   :  { %682 = vmatpush1.bf16.msra.mxu0 %v1372_v14  ;;  %v320_v14 = vrot.slane %v311_v9, %v319_v10 }
  0xf5   :  { %683 = vmatprep.subr.bf16.mxu0 %v1380_v19 }
  0xf8   :  { %684 = vmatpush1.bf16.msra.mxu0 %v1378_v21 }
  0xf9   :  { %1223 = vmatprep.subr.bf16.mxu0 %v1384_v23 }
 0x111   :  { %v232_v13 = vpop.f32.mrb[0].mxu1 }
 0x112   :  { %v234_v16 = vpop.f32.mrb[1].mxu1 }
 0x113   :  { %v236_v17 = vpop.f32.mrb[2].mxu1 }
 0x114   :  { %v238_v18 = vpop.f32.mrb[3].mxu1 }
 0x18e   :  { %v165_v25 = vpop.f32.mrb[0].mxu0 }
 0x18f   :  { %v233_v26 = vadd.f32 %v232_v13, %v165_v25  ;;  %v167_v27 = vpop.f32.mrb[1].mxu0  ;;  %v324_v13 = vrot.slane %v311_v9, %v323_v8 }
 0x190   :  { %v235_v28 = vadd.f32 %v234_v16, %v167_v27 }
 0x191   :  { %v241_v33 = vmax.f32 %v233_v26, 0.0 }
 0x192   :  { %v171_v29 = vpop.f32.mrb[2].mxu0  ;;  %v242_v35 = vmax.f32 %v235_v28, 0.0 }
 0x193   :  { %v237_v30 = vadd.f32 %v236_v17, %v171_v29  ;;  %v173_v31 = vpop.f32.mrb[3].mxu0 }
 0x194   :  { %v239_v32 = vadd.f32 %v238_v18, %v173_v31 }
 0x195   :  { %v243_v34 = vmax.f32 %v237_v30, 0.0 }
 0x196   :  { %v244_v36 = vmax.f32 %v239_v32, 0.0 }
 0x197   :  { %v245_v37 = vpack.c.bf16 %v243_v34, %v241_v33 }
 0x198   :  { %v246_v38 = vpack.c.bf16 %v244_v36, %v242_v35 }
 0x19a   :  { %685 = vmatprep.mubr.bf16.mxu0 %v246_v38  ;;  %728 = vmatprep.mubr.bf16.mxu1 %v246_v38 }
 0x19b   :  { %686 = vmatmul.mubr.bf16.vlgmr.msra.gmra.mrb[4].mxu0 %v245_v37  ;;  %729 = vmatmul.mubr.bf16.vlgmr.msra.gmra.mrb[4].mxu1 %v245_v37 }
 0x19c   :  { %1224 = vmatpush3.bf16.msra.mxu0 %v1386_v39  ;;  %1246 = vmatpush3.bf16.msra.mxu1 %v1387_v41 }
 0x19d   :  { %1225 = vmatprep.subr.bf16.mxu0 %v1388_v42  ;;  %1247 = vmatprep.subr.bf16.mxu1 %v1389_v43 }
 0x1a0   :  { %1226 = vmatpush3.bf16.msra.mxu0 %v1390_v44  ;;  %1248 = vmatpush3.bf16.msra.mxu1 %v1391_v45 }
 0x1a1   :  { %1227 = vmatprep.subr.bf16.mxu0 %v1392_v46  ;;  %1249 = vmatprep.subr.bf16.mxu1 %v1393_v47  ;;  %v1190_v46 = vld [vmem:[%s1663_s7] ss:$0 sm:$0xff]  ;;  %s1486_s7 = scalar_lea.vmem %s1106_s9, 256 }
 0x1a2   :  { %p1487_p10 = scmp.ne.s32.totalorder %s1106_s9, %s1486_s7  ;;  %p1492_p12 = scmp.lt.s32.totalorder %s1486_s7, %s1486_s7 }
 0x1a4   :  { %1228 = vmatpush3.bf16.msra.mxu0 %v1394_v48  ;;  %1250 = vmatpush3.bf16.msra.mxu1 %v1395_v49  ;;  %p1493_p13 = por %p1492_p12, %p1491_p11 }
 0x1a5   :  { %1229 = vmatprep.subr.bf16.mxu0 %v1396_v50  ;;  %1251 = vmatprep.subr.bf16.mxu1 %v1397_v51 }
 0x1a6   :  { %p1494_p0 = pnand %p1493_p13, %p1487_p10 }
 0x1a8   :  { %1230 = vmatpush3.bf16.msra.mxu0 %v1398_v52  ;;  %1252 = vmatpush3.bf16.msra.mxu1 %v1399_v53 }
 0x1a9   :  { %1231 = vmatprep.subr.bf16.mxu0 %v1400_v54  ;;  %1253 = vmatprep.subr.bf16.mxu1 %v1401_v55 }
 0x1ac   :  { %1232 = vmatpush3.bf16.msra.mxu0 %v1402_v56  ;;  %1254 = vmatpush3.bf16.msra.mxu1 %v1403_v57 }
 0x1ad   :  { %1233 = vmatprep.subr.bf16.mxu0 %v1404_v58  ;;  %1255 = vmatprep.subr.bf16.mxu1 %v1405_v59 }
 0x1b0   :  { %1234 = vmatpush3.bf16.msra.mxu0 %v1406_v60  ;;  %1256 = vmatpush3.bf16.msra.mxu1 %v1407_v61 }
 0x1b1   :  { %1235 = vmatprep.subr.bf16.mxu0 %v1408_v62  ;;  %1257 = vmatprep.subr.bf16.mxu1 %v1409_v63 }
 0x1b4   :  { %1236 = vmatpush3.bf16.msra.mxu0 %v1410_v0  ;;  %1258 = vmatpush3.bf16.msra.mxu1 %v1411_v1 }
 0x1b5   :  { %1237 = vmatprep.subr.bf16.mxu0 %v1412_v2  ;;  %1259 = vmatprep.subr.bf16.mxu1 %v1413_v3 }
 0x1b8   :  { %1238 = vmatpush3.bf16.msra.mxu0 %v1414_v4  ;;  %1260 = vmatpush3.bf16.msra.mxu1 %v1415_v5 }
 0x26e   :  { %v687_v16 = vpop.f32.mrb[4].mxu0  ;;  %v730_v17 = vpop.f32.mrb[4].mxu1 }
 0x26f   :  { %v688_v18 = vadd.f32 %v687_v16, %v316_v12  ;;  %v731_v19 = vadd.f32 %v730_v17, %v324_v13  ;;  %v689_v20 = vpop.f32.mrb[5].mxu0  ;;  %v732_v21 = vpop.f32.mrb[5].mxu1 }
 0x270   :  { %v690_v22 = vadd.f32 %v689_v20, %v320_v14  ;;  %v733_v40 = vadd.f32 %v732_v21, %v328_v15  ;;  %v691_v23 = vpop.f32.mrb[6].mxu0  ;;  %v734_v24 = vpop.f32.mrb[6].mxu1 }
 0x271   :  { %v692_v25 = vadd.f32 %v691_v23, %v316_v12  ;;  %v735_v26 = vadd.f32 %v734_v24, %v324_v13  ;;  %v693_v27 = vpop.f32.mrb[7].mxu0  ;;  %v736_v28 = vpop.f32.mrb[7].mxu1  ;;  %v739_v31 = vmax.f32 %v688_v18, 0.0  ;;  %v741_v32 = vmax.f32 %v731_v19, 0.0 }
 0x272   :  { %v694_v29 = vadd.f32 %v693_v27, %v320_v14  ;;  %v737_v30 = vadd.f32 %v736_v28, %v328_v15  ;;  %v740_v35 = vmax.f32 %v690_v22, 0.0  ;;  %v742_v36 = vmax.f32 %v733_v40, 0.0 }
 0x273   :  { %v743_v33 = vmax.f32 %v692_v25, 0.0  ;;  %v745_v34 = vmax.f32 %v735_v26, 0.0 }
 0x274   :  { %v744_v37 = vmax.f32 %v694_v29, 0.0  ;;  %v746_v38 = vmax.f32 %v737_v30, 0.0 }
 0x275   :  { %v747_v39 = vpack.c.bf16 %v743_v33, %v739_v31  ;;  %v749_v41 = vpack.c.bf16 %v745_v34, %v741_v32 }
 0x276   :  { %v748_v42 = vpack.c.bf16 %v744_v37, %v740_v35  ;;  %v750_v43 = vpack.c.bf16 %v746_v38, %v742_v36 }
 0x278   :  { %1046 = vmatprep.mubr.bf16.mxu0 %v748_v42  ;;  %1087 = vmatprep.mubr.bf16.mxu1 %v750_v43 }
 0x279   :  { %1047 = vmatmul.mubr.bf16.vlgmr.msra.gmra.mrb[8].mxu0 %v747_v39  ;;  %1088 = vmatmul.mubr.bf16.vlgmr.msra.gmra.mrb[8].mxu1 %v749_v41 }
 0x34c   :  { %v1239_v44 = vpop.f32.mrb[8].mxu0  ;;  %v1261_v45 = vpop.f32.mrb[8].mxu1 }
 0x34d   :  { %v1240_v47 = vpop.f32.mrb[9].mxu0  ;;  %v1262_v48 = vpop.f32.mrb[9].mxu1 }
 0x34e   :  { %v1241_v49 = vadd.f32 %v1240_v47, %v1239_v44  ;;  %v1263_v50 = vadd.f32 %v1262_v48, %v1261_v45  ;;  %v1242_v51 = vpop.f32.mrb[10].mxu0  ;;  %v1264_v52 = vpop.f32.mrb[10].mxu1 }
 0x34f   :  { %v1243_v53 = vpop.f32.mrb[11].mxu0  ;;  %v1265_v54 = vpop.f32.mrb[11].mxu1 }
 0x350   :  { %v1049_v55 = vadd.f32 %v1241_v49, %v1190_v46  ;;  %v1244_v56 = vadd.f32 %v1243_v53, %v1242_v51  ;;  %v1266_v57 = vadd.f32 %v1265_v54, %v1264_v52 }
 0x352   :  { %v1090_v58 = vadd.f32 %v1263_v50, %v1049_v55  ;;  %v1052_v59 = vadd.f32 %v1244_v56, %v1190_v46 }
 0x354   :  { %1416 = vtanh.f32 %v1090_v58  ;;  %v1093_v60 = vadd.f32 %v1266_v57, %v1052_v59 }
 0x356   :  { %1418 = vtanh.f32 %v1093_v60 }
 0x35e   :  { %v1417_v61 = vpop.eup %1416 }
 0x35f   :  { %1098 = vst [vmem:[#allocation8] sm:$0xff] %v1417_v61 }
 0x360   :  { %v1419_v62 = vpop.eup %1418 }
 0x361   :  { %1099 = vst [vmem:[#allocation8 + $0x8] sm:$0xff] %v1419_v62 }
 0x362   :  { %1497 = shalt.err (!%p1494_p0)
}
 0x363   :  { %s1498_s12 = scalar_lea.hbm %s1664_s8, 256 }
 0x364   :  { %p1499_p1 = scmp.ne.s32.totalorder %s1664_s8, %s1498_s12  ;;  %p1502_p2 = scmp.lt.u32.totalorder %s1498_s12, %s1664_s8 }
 0x366   :  { %p1504_p3 = pnand %p1502_p2, %p1499_p1 }
 0x368   :  { %1507 = shalt.err (!%p1504_p3)
}
 0x369   :  { %s1524_s19 = smov 128   ;;  %s1525_s20 = smov 8  }
 0x36a   :  { %1111 = dma.vmem_to_hbm [thread:$0]  %s1106_s9, 256, %s1664_s8, [#allocation4], %s1524_s19, %s1524_s19, %s1525_s20  }
 0x36b   :  { %1512 = dma.done.wait [#allocation4], 256  }
 0x36c   :  { %1513 = vsyncadd [#allocation4], 4294967040 }
 0x36d   :  { %1115 = vsyncpa [#allocation3], 1 }
 0x36e   :  { %1116 = vsyncpa [#allocation6], 1 }
 0x36f   :  { %1117 = vsyncpa [#allocation4], 1 }

</bundles_post_ra>
